<compile_context>
chip_gen: v7x
topology: tpu7x:2x2x1
jax: 0.10.0
libtpu: 0.0.40
codegen_flags: <defaults>
</compile_context>

<pallas_src>
import jax
import jax.numpy as jnp
from jax.experimental import pallas as pl
from jax.experimental.pallas import tpu as pltpu


def _policy_mlp_low_kernel(x_ref, w1_ref, b1_ref, w2_ref, b2_ref, out_ref):
    # x_ref:  (TB, D_in)   w1_ref: (D_in, H)   b1_ref: (1, H)
    # w2_ref: (H, E)       b2_ref: (1, E)      out_ref: (TB, E)
    x = x_ref[...]

    # hidden = relu(x @ W1^T + b1)   (W1 pre-transposed in wrapper)
    h = jnp.dot(x, w1_ref[...], preferred_element_type=jnp.float32) + b1_ref[...]
    h = jnp.maximum(h, 0.0)

    # output = hidden @ W2^T + b2
    out = jnp.dot(h, w2_ref[...], preferred_element_type=jnp.float32) + b2_ref[...]
    out_ref[...] = out.astype(out_ref.dtype)


def prepare_params(w1, b1, w2, b2):
    """One-time prep: transpose weights to (in, out) layout, reshape biases,
    cast to f32.  Call once, reuse across every forward step."""
    w1_t = jnp.asarray(w1, jnp.float32).T            # (D_in, H)
    b1_r = jnp.asarray(b1, jnp.float32).reshape(1, -1)   # (1, H)
    w2_t = jnp.asarray(w2, jnp.float32).T            # (H, E)
    b2_r = jnp.asarray(b2, jnp.float32).reshape(1, -1)   # (1, E)
    return w1_t, b1_r, w2_t, b2_r


def policy_mlp_low_forward(agent_state, w1_t, b1, w2_t, b2, *, block_b=128):
    """Forward pass of PolicyMLP_Low (eval mode).

    agent_state: (B, mlp_input_dim_low) f32
    w1_t: (mlp_input_dim_low, mlp_hidden_dim)  (pre-transposed)
    b1:   (1, mlp_hidden_dim)
    w2_t: (mlp_hidden_dim, ent_dim)            (pre-transposed)
    b2:   (1, ent_dim)
    Returns (B, 1, ent_dim), matching `output = mlp_l2(hidden).unsqueeze(1)`.
    """
    B, D_in = agent_state.shape
    H = w1_t.shape[1]
    E = w2_t.shape[1]

    tb = min(block_b, B)
    grid = (pl.cdiv(B, tb),)

    out = pl.pallas_call(
        _policy_mlp_low_kernel,
        out_shape=jax.ShapeDtypeStruct((B, E), jnp.float32),
        grid_spec=pltpu.PrefetchScalarGridSpec(
            num_scalar_prefetch=0,
            grid=grid,
            in_specs=[
                pl.BlockSpec((tb, D_in), lambda i: (i, 0)),   # batch-tiled input
                pl.BlockSpec((D_in, H), lambda i: (0, 0)),    # weights resident
                pl.BlockSpec((1, H), lambda i: (0, 0)),
                pl.BlockSpec((H, E), lambda i: (0, 0)),
                pl.BlockSpec((1, E), lambda i: (0, 0)),
            ],
            out_specs=pl.BlockSpec((tb, E), lambda i: (i, 0)),
        ),
        compiler_params=pltpu.CompilerParams(
            dimension_semantics=("parallel",)),
    )(agent_state.astype(jnp.float32), w1_t, b1, w2_t, b2)

    # unsqueeze(1): free layout plumbing in the wrapper.
    return out[:, None, :]


def _reference_forward(agent_state, w1, b1, w2, b2):
    hidden = jnp.maximum(agent_state @ w1.T + b1, 0.0)
    output = hidden @ w2.T + b2
    return output[:, None, :]


if __name__ == "__main__":
    # config = {'mlp_input_dim_low': 64, 'mlp_hidden_dim': 128, 'ent_dim': 32,
    #           'dp0_ll': 0.0, 'dp1_ll': 0.0, 'dp2_ll': 0.0}
    B, D_IN, HID, ENT = 8, 64, 128, 32

    key = jax.random.PRNGKey(0)
    k1, k2, k3, k4, k5 = jax.random.split(key, 5)

    # PyTorch nn.Linear init: U(-1/sqrt(fan_in), 1/sqrt(fan_in)).
    bound1 = 1.0 / (D_IN ** 0.5)
    bound2 = 1.0 / (HID ** 0.5)
    w1 = jax.random.uniform(k1, (HID, D_IN), jnp.float32, -bound1, bound1)
    b1 = jax.random.uniform(k2, (HID,), jnp.float32, -bound1, bound1)
    w2 = jax.random.uniform(k3, (ENT, HID), jnp.float32, -bound2, bound2)
    b2 = jax.random.uniform(k4, (ENT,), jnp.float32, -bound2, bound2)

    agent_state = jax.random.normal(k5, (B, D_IN), jnp.float32)

    # One-time parameter prep (hoisted out of the per-call path).
    w1_t, b1_r, w2_t, b2_r = prepare_params(w1, b1, w2, b2)

    out = policy_mlp_low_forward(agent_state, w1_t, b1_r, w2_t, b2_r)
    jax.block_until_ready(out)

    out_ref = _reference_forward(agent_state, w1, b1, w2, b2)
    assert out.shape == (B, 1, ENT), f"bad output shape {out.shape}"
    assert jnp.allclose(out, out_ref, atol=1e-5), "output mismatch vs reference"

    print("KERNEL_OK")
</pallas_src>

<mosaic_0001>
module attributes {stable_mosaic.version = 11 : i64} {
  func.func @_policy_mlp_low_kernel(%arg0: i32, %arg1: memref<8x64xf32, #tpu.memory_space<vmem>>, %arg2: memref<64x128xf32, #tpu.memory_space<vmem>>, %arg3: memref<1x128xf32, #tpu.memory_space<vmem>>, %arg4: memref<128x32xf32, #tpu.memory_space<vmem>>, %arg5: memref<1x32xf32, #tpu.memory_space<vmem>>, %arg6: memref<8x32xf32, #tpu.memory_space<vmem>>) attributes {dimension_semantics = [#tpu.dimension_semantics<parallel>], iteration_bounds = array<i64: 1>, scalar_prefetch = 0 : i64, scratch_operands = 0 : i64, tpu.core_type = #tpu.core_type<tc>, window_params = [{transform_indices = @transform_0, window_bounds = array<i64: 8, 64>}, {pipeline_mode = #tpu.pipeline_mode<synchronous>, transform_indices = @transform_1, window_bounds = array<i64: 64, 128>}, {pipeline_mode = #tpu.pipeline_mode<synchronous>, transform_indices = @transform_2, window_bounds = array<i64: 1, 128>}, {pipeline_mode = #tpu.pipeline_mode<synchronous>, transform_indices = @transform_3, window_bounds = array<i64: 128, 32>}, {pipeline_mode = #tpu.pipeline_mode<synchronous>, transform_indices = @transform_4, window_bounds = array<i64: 1, 32>}, {transform_indices = @transform_5, window_bounds = array<i64: 8, 32>}]} {
    %c0 = arith.constant 0 : index
    %c0_0 = arith.constant 0 : index
    %0 = vector.load %arg1[%c0, %c0_0] : memref<8x64xf32, #tpu.memory_space<vmem>>, vector<8x64xf32>
    %c0_1 = arith.constant 0 : index
    %c0_2 = arith.constant 0 : index
    %1 = vector.load %arg2[%c0_1, %c0_2] : memref<64x128xf32, #tpu.memory_space<vmem>>, vector<64x128xf32>
    %cst = arith.constant dense<0.000000e+00> : vector<8x128xf32>
    %2 = tpu.matmul %0, %1, %cst {dimension_numbers = #tpu.dot_dimension_numbers<[1], [0], [0], [1], [0, 0, 1, 1], [], []>} : vector<8x64xf32>, vector<64x128xf32>, vector<8x128xf32> -> vector<8x128xf32>
    %c0_3 = arith.constant 0 : index
    %c0_4 = arith.constant 0 : index
    %3 = vector.load %arg3[%c0_3, %c0_4] : memref<1x128xf32, #tpu.memory_space<vmem>>, vector<1x128xf32>
    %4 = vector.broadcast %3 : vector<1x128xf32> to vector<8x128xf32>
    %5 = arith.addf %2, %4 : vector<8x128xf32>
    %cst_5 = arith.constant 0.000000e+00 : f32
    %6 = vector.broadcast %cst_5 : f32 to vector<8x128xf32>
    %7 = arith.maximumf %5, %6 : vector<8x128xf32>
    %c0_6 = arith.constant 0 : index
    %c0_7 = arith.constant 0 : index
    %8 = vector.load %arg4[%c0_6, %c0_7] : memref<128x32xf32, #tpu.memory_space<vmem>>, vector<128x32xf32>
    %cst_8 = arith.constant dense<0.000000e+00> : vector<8x32xf32>
    %9 = tpu.matmul %7, %8, %cst_8 {dimension_numbers = #tpu.dot_dimension_numbers<[1], [0], [0], [1], [0, 0, 1, 1], [], []>} : vector<8x128xf32>, vector<128x32xf32>, vector<8x32xf32> -> vector<8x32xf32>
    %c0_9 = arith.constant 0 : index
    %c0_10 = arith.constant 0 : index
    %10 = vector.load %arg5[%c0_9, %c0_10] : memref<1x32xf32, #tpu.memory_space<vmem>>, vector<1x32xf32>
    %11 = vector.broadcast %10 : vector<1x32xf32> to vector<8x32xf32>
    %12 = arith.addf %9, %11 : vector<8x32xf32>
    %c0_11 = arith.constant 0 : index
    %c0_12 = arith.constant 0 : index
    %13 = vector.load %arg6[%c0_11, %c0_12] : memref<8x32xf32, #tpu.memory_space<vmem>>, vector<8x32xf32>
    tpu.vector_store %arg6[%c0_11, %c0_12], %12 {strides = array<i32>} : memref<8x32xf32, #tpu.memory_space<vmem>>, vector<8x32xf32>,
    return
  }
  func.func @transform_0(%arg0: i32) -> (i32, i32) {
    %c0_i32 = arith.constant 0 : i32
    %c0_i32_0 = arith.constant 0 : i32
    return %arg0, %c0_i32 : i32, i32
  }
  func.func @transform_1(%arg0: i32) -> (i32, i32) {
    %c0_i32 = arith.constant 0 : i32
    %c0_i32_0 = arith.constant 0 : i32
    %c0_i32_1 = arith.constant 0 : i32
    return %c0_i32, %c0_i32_0 : i32, i32
  }
  func.func @transform_2(%arg0: i32) -> (i32, i32) {
    %c0_i32 = arith.constant 0 : i32
    %c0_i32_0 = arith.constant 0 : i32
    %c0_i32_1 = arith.constant 0 : i32
    return %c0_i32, %c0_i32_0 : i32, i32
  }
  func.func @transform_3(%arg0: i32) -> (i32, i32) {
    %c0_i32 = arith.constant 0 : i32
    %c0_i32_0 = arith.constant 0 : i32
    %c0_i32_1 = arith.constant 0 : i32
    return %c0_i32, %c0_i32_0 : i32, i32
  }
  func.func @transform_4(%arg0: i32) -> (i32, i32) {
    %c0_i32 = arith.constant 0 : i32
    %c0_i32_0 = arith.constant 0 : i32
    %c0_i32_1 = arith.constant 0 : i32
    return %c0_i32, %c0_i32_0 : i32, i32
  }
  func.func @transform_5(%arg0: i32) -> (i32, i32) {
    %c0_i32 = arith.constant 0 : i32
    %c0_i32_0 = arith.constant 0 : i32
    return %arg0, %c0_i32 : i32, i32
  }
}

</mosaic_0001>

<bundles_post_ra>
// kernel: tpu_custom_call.1
= control target key start
LH: loop header
LB: loop body
LE: loop exit
PB: predicated region body
PF: predicated region fallthrough
CT: control target
= control target key end

     0   :  { %v368_v3 = vmov 0.0|0.0   ;;  %vm369_vm0 = vmmov 0   ;;  %v370_v6 = vmov 0.0   ;;  %s495_s0 = inlined_call_operand.vmem [shape: f32[8,64], index: 0, kind: input, shape index: {}]   ;;  %s496_s1 = inlined_call_operand.vmem [shape: f32[64,128], index: 1, kind: input, shape index: {}]   ;;  %s497_s2 = inlined_call_operand.vmem [shape: f32[1,128], index: 2, kind: input, shape index: {}]   ;;  %s498_s3 = inlined_call_operand.vmem [shape: f32[128,32], index: 3, kind: input, shape index: {}]   ;;  %s499_s4 = inlined_call_operand.vmem [shape: f32[1,32], index: 4, kind: input, shape index: {}]   ;;  %s500_s5 = inlined_call_operand.hbm [shape: f32[8,32], index: 5, kind: output, shape index: {}]  }
   0x1   :  { %v22_v0 = vld [vmem:[%s496_s1] sm:$0xff]  ;;  %v23_v1 = vld [vmem:[%s496_s1 + $0x8] sm:$0xff]  ;;  %v24_v2 = vld [vmem:[%s496_s1 + $0x10] sm:$0xff]  ;;  %304 = vmatprep.subr.bf16.mxu0 %v368_v3  ;;  %266 = vmatprep.mubr.msk.f32.mxu0 %vm369_vm0, %v370_v6 }
   0x2   :  { %v305_v4 = vpack.c.bf16 %v23_v1, %v22_v0  ;;  %v25_v5 = vld [vmem:[%s496_s1 + $0x18] sm:$0xff]  ;;  %316 = vmatprep.subr.bf16.mxu1 %v368_v3  ;;  %301 = vmatprep.mubr.msk.f32.mxu1 %vm369_vm0, %v370_v6  ;;  %v112_v8 = vld [vmem:[%s498_s3] sm:$0xff]  ;;  %v113_v9 = vld [vmem:[%s498_s3 + $0x8] sm:$0xff] }
   0x3   :  { %v308_v7 = vpack.c.bf16 %v25_v5, %v24_v2  ;;  %v114_v10 = vld [vmem:[%s498_s3 + $0x10] sm:$0xff]  ;;  %v26_v11 = vld [vmem:[%s496_s1 + $0x20] sm:$0xff]  ;;  %v27_v12 = vld [vmem:[%s496_s1 + $0x28] sm:$0xff]  ;;  %v317_v13 = vpack.c.bf16 %v113_v9, %v112_v8 }
   0x4   :  { %306 = vmatpush3.bf16.msra.mxu0 %v305_v4  ;;  %v115_v14 = vld [vmem:[%s498_s3 + $0x18] sm:$0xff]  ;;  %v311_v16 = vpack.c.bf16 %v27_v12, %v26_v11  ;;  %v116_v17 = vld [vmem:[%s498_s3 + $0x20] sm:$0xff]  ;;  %v117_v18 = vld [vmem:[%s498_s3 + $0x28] sm:$0xff] }
   0x5   :  { %307 = vmatprep.subr.bf16.mxu0 %v368_v3  ;;  %318 = vmatpush3.bf16.msra.mxu1 %v317_v13  ;;  %v320_v15 = vpack.c.bf16 %v115_v14, %v114_v10  ;;  %v28_v19 = vld [vmem:[%s496_s1 + $0x30] sm:$0xff]  ;;  %v29_v20 = vld [vmem:[%s496_s1 + $0x38] sm:$0xff] }
   0x6   :  { %319 = vmatprep.subr.bf16.mxu1 %v368_v3 }
   0x8   :  { %309 = vmatpush3.bf16.msra.mxu0 %v308_v7 }
   0x9   :  { %310 = vmatprep.subr.bf16.mxu0 %v368_v3 }
   0xa   :  { %10 = vsyncpa [#allocation3], 0  ;;  %321 = vmatpush3.bf16.msra.mxu1 %v320_v15  ;;  %v323_v21 = vpack.c.bf16 %v117_v18, %v116_v17  ;;  %v314_v22 = vpack.c.bf16 %v29_v20, %v28_v19  ;;  %v118_v23 = vld [vmem:[%s498_s3 + $0x30] sm:$0xff]  ;;  %v119_v24 = vld [vmem:[%s498_s3 + $0x38] sm:$0xff]  ;;  %vm37_vm1 = vcmask 523264   ;;  %s371_s20 = smov [#allocation2]  }
   0xb   :  { %322 = vmatprep.subr.bf16.mxu1 %v368_v3  ;;  %v326_v25 = vpack.c.bf16 %v119_v24, %v118_v23  ;;  %v21_v26 = vld [vmem:[%s495_s0] sm:$0xff]  ;;  %v121_v28 = vld [vmem:[%s498_s3 + $0x48] sm:$0xff]  ;;  %v122_v30 = vld [vmem:[%s498_s3 + $0x50] sm:$0xff]  ;;  %s213_s21 = sshll.u32 %s371_s20, 4  ;;  %vm205_vm2 = vcmask 261120   ;;  %s214_s21 = int_to_ptr.vmem [resolvable:$true] %s213_s21 }
   0xc   :  { %312 = vmatpush3.bf16.msra.mxu0 %v311_v16  ;;  %v120_v27 = vld [vmem:[%s498_s3 + $0x40] sm:$0xff]  ;;  %v123_v31 = vld [vmem:[%s498_s3 + $0x58] sm:$0xff]  ;;  %v125_v34 = vld [vmem:[%s498_s3 + $0x68] sm:$0xff]  ;;  %p349_p1 = scmp.lt.s32.totalorder %s214_s21, %s214_s21 }
   0xd   :  { %313 = vmatprep.subr.bf16.mxu0 %v368_v3  ;;  %v329_v29 = vpack.c.bf16 %v121_v28, %v120_v27  ;;  %v332_v32 = vpack.c.bf16 %v123_v31, %v122_v30  ;;  %v124_v33 = vld [vmem:[%s498_s3 + $0x60] sm:$0xff]  ;;  %v126_v36 = vld [vmem:[%s498_s3 + $0x70] sm:$0xff]  ;;  %v127_v37 = vld [vmem:[%s498_s3 + $0x78] sm:$0xff]  ;;  %s344_s3 = scalar_lea.vmem %s214_s21, 128 }
   0xe   :  { %324 = vmatpush3.bf16.msra.mxu1 %v323_v21  ;;  %v335_v35 = vpack.c.bf16 %v125_v34, %v124_v33  ;;  %v338_v38 = vpack.c.bf16 %v127_v37, %v126_v36  ;;  %v221_v39 = vld [vmem:[%s497_s2] ss:$0 sm:$0xff]  ;;  %p345_p0 = scmp.ne.s32.totalorder %s214_s21, %s344_s3  ;;  %p350_p2 = scmp.lt.s32.totalorder %s344_s3, %s344_s3 }
   0xf   :  { %325 = vmatprep.subr.bf16.mxu1 %v368_v3  ;;  %v223_v44 = vld [vmem:[%s499_s4] ss:$0 sm:$0xff] }
  0x10   :  { %315 = vmatpush3.bf16.msra.mxu0 %v314_v22  ;;  %p351_p3 = por %p350_p2, %p349_p1 }
  0x12   :  { %327 = vmatpush3.bf16.msra.mxu1 %v326_v25  ;;  %p352_p4 = pnand %p351_p3, %p345_p0 }
  0x13   :  { %267 = vmatmul.mubr.msk.f32.vlgmr.msra.gmra.mrb[0].mxu0 %vm37_vm1, %v21_v26  ;;  %328 = vmatprep.subr.bf16.mxu1 %v368_v3 }
  0x16   :  { %330 = vmatpush3.bf16.msra.mxu1 %v329_v29 }
  0x17   :  { %331 = vmatprep.subr.bf16.mxu1 %v368_v3 }
  0x1a   :  { %333 = vmatpush3.bf16.msra.mxu1 %v332_v32 }
  0x1b   :  { %334 = vmatprep.subr.bf16.mxu1 %v368_v3 }
  0x1e   :  { %336 = vmatpush3.bf16.msra.mxu1 %v335_v35 }
  0x1f   :  { %337 = vmatprep.subr.bf16.mxu1 %v368_v3 }
  0x22   :  { %339 = vmatpush3.bf16.msra.mxu1 %v338_v38 }
  0xe6   :  { %v107_v40 = vpop.f32.mrb[0].mxu0 }
  0xe7   :  { %v108_v41 = vadd.f32 %v221_v39, %v107_v40  ;;  %v268_v42 = vpop.f32.mrb[1].mxu0 }
  0xe9   :  { %v111_v43 = vmax.f32 %v108_v41, 0.0 }
  0xeb   :  { %302 = vmatmul.mubr.f32.vlgmr.msra.gmra.mrb[0].mxu1 %v111_v43 }
 0x1be   :  { %v201_v45 = vpop.f32.mrb[0].mxu1 }
 0x1bf   :  { %v202_v46 = vadd.f32 %v223_v44, %v201_v45  ;;  %v303_v47 = vpop.f32.mrb[1].mxu1 }
 0x1c1   :  { %206 = vst.msk [vmem:[#allocation2] sm:$0xff] %vm205_vm2, %v202_v46 }
 0x1c2   :  { %355 = shalt.err (!%p352_p4)
}
 0x1c3   :  { %s356_s23 = scalar_lea.hbm %s500_s5, 128 }
 0x1c4   :  { %p357_p5 = scmp.ne.s32.totalorder %s500_s5, %s356_s23  ;;  %p360_p6 = scmp.lt.u32.totalorder %s356_s23, %s500_s5 }
 0x1c6   :  { %p362_p7 = pnand %p360_p6, %p357_p5 }
 0x1c8   :  { %365 = shalt.err (!%p362_p7)
}
 0x1c9   :  { %216 = dma.vmem_to_hbm [thread:$0]  %s214_s21, 128, %s500_s5, [#allocation3]  }
 0x1ca   :  { %366 = dma.done.wait [#allocation3], 128  }
 0x1cb   :  { %367 = vsyncadd [#allocation3], 4294967168 }
 0x1cc   :  { %220 = vsyncpa [#allocation3], 1 }

</bundles_post_ra>
